<compile_context>
chip_gen: v7x
topology: tpu7x:2x2x1
jax: 0.10.0
libtpu: 0.0.40
codegen_flags: <defaults>
</compile_context>

<pallas_src>
from functools import partial

import numpy as np
import jax
import jax.numpy as jnp
from jax.experimental import pallas as pl
from jax.experimental.pallas import tpu as pltpu


def _stencil_kernel(x_ref, o_ref, *, taps_per_oc, oh, ow):
    """Direct stencil on one batch element.

    x_ref: (1, IC, H, W) image slab in VMEM
    o_ref: (1, OC, OH, OW) output slab in VMEM
    taps_per_oc[oc] = tuple of (ic, kh, kw, coeff) with coeff = filter/resol,
    baked in as compile-time Python constants (zero taps already dropped).
    """
    imgs = {}

    def get_img(ic):
        if ic not in imgs:
            imgs[ic] = x_ref[0, ic].astype(jnp.float32)   # (H, W) load once
        return imgs[ic]

    for oc, taps in enumerate(taps_per_oc):
        acc = jnp.zeros((oh, ow), jnp.float32)
        for (ic, kh, kw, coeff) in taps:
            # static shifted slice of the resident image + constant multiply
            acc = acc + get_img(ic)[kh:kh + oh, kw:kw + ow] * coeff
        o_ref[0, oc] = acc.astype(o_ref.dtype)


def conv2d_derivative_forward(x, der_filter, resol):
    """Forward pass of Conv2dDerivative: VALID conv with a fixed filter, then / resol.

    `der_filter` must be a concrete (OC, IC, KH, KW) constant (as in the
    PyTorch module, where it is a frozen nn.Parameter).
    """
    B, IC, H, W = x.shape
    filt = np.asarray(der_filter, dtype=np.float64)       # concrete constant
    OC, ICf, KH, KW = filt.shape
    assert IC == ICf, (IC, ICf)
    OH = H - KH + 1
    OW = W - KW + 1

    # Fold 1/resol into the (tiny, fixed) filter and drop zero taps.
    scale = 1.0 / float(resol)
    taps_per_oc = []
    for oc in range(OC):
        taps = []
        for ic in range(IC):
            for kh in range(KH):
                for kw in range(KW):
                    c = float(filt[oc, ic, kh, kw])
                    if c != 0.0:
                        taps.append((ic, kh, kw, c * scale))
        taps_per_oc.append(tuple(taps))
    taps_per_oc = tuple(taps_per_oc)

    kernel = partial(_stencil_kernel, taps_per_oc=taps_per_oc, oh=OH, ow=OW)

    return pl.pallas_call(
        kernel,
        out_shape=jax.ShapeDtypeStruct((B, OC, OH, OW), x.dtype),
        grid=(B,),
        in_specs=[
            pl.BlockSpec((1, IC, H, W), lambda b: (b, 0, 0, 0)),
        ],
        out_specs=pl.BlockSpec((1, OC, OH, OW), lambda b: (b, 0, 0, 0)),
        compiler_params=pltpu.CompilerParams(
            dimension_semantics=("parallel",)),   # dual-TC sharding on v7x
    )(x)


def _reference_forward(x, der_filter, resol):
    """Pure-JAX reference (correctness check only)."""
    y = jax.lax.conv_general_dilated(
        x, der_filter, window_strides=(1, 1), padding="VALID",
        dimension_numbers=("NCHW", "OIHW", "NCHW"))
    return y / resol


if __name__ == "__main__":
    # Conv2dDerivative config (PhyCRNet-AllenCahn laplacian): 1->1 channels, 5x5 filter
    lapl = jnp.array(
        [[[[0.0,          0.0,        -1.0 / 12.0,  0.0,         0.0],
           [0.0,          0.0,         4.0 / 3.0,   0.0,         0.0],
           [-1.0 / 12.0,  4.0 / 3.0,  -5.0,         4.0 / 3.0,  -1.0 / 12.0],
           [0.0,          0.0,         4.0 / 3.0,   0.0,         0.0],
           [0.0,          0.0,        -1.0 / 12.0,  0.0,         0.0]]]],
        dtype=jnp.float32)                                 # (1, 1, 5, 5) DerFilter
    dx = 1.0 / 16.0
    resol = dx * dx                                        # (dx**2) for the laplacian

    B, IC, H, W = 2, 1, 16, 16
    key = jax.random.PRNGKey(0)
    x = jax.random.normal(key, (B, IC, H, W), dtype=jnp.float32)

    out = conv2d_derivative_forward(x, lapl, resol)
    out = jax.block_until_ready(out)

    ref = _reference_forward(x, lapl, resol)
    assert out.shape == ref.shape, (out.shape, ref.shape)
    assert jnp.allclose(out, ref, rtol=1e-4, atol=1e-3), (
        float(jnp.max(jnp.abs(out - ref))))

    print("KERNEL_OK")
</pallas_src>

<mosaic_0001>
module attributes {stable_mosaic.version = 11 : i64} {
  func.func @_stencil_kernel(%arg0: i32, %arg1: memref<1x1x16x16xf32, #tpu.memory_space<vmem>>, %arg2: memref<1x1x12x12xf32, #tpu.memory_space<vmem>>) attributes {dimension_semantics = [#tpu.dimension_semantics<parallel>], iteration_bounds = array<i64: 2>, scalar_prefetch = 0 : i64, scratch_operands = 0 : i64, tpu.core_type = #tpu.core_type<tc>, window_params = [{transform_indices = @transform_0, window_bounds = array<i64: 1, 1, 16, 16>}, {transform_indices = @transform_1, window_bounds = array<i64: 1, 1, 12, 12>}]} {
    %cst = arith.constant 0.000000e+00 : f32
    %0 = vector.broadcast %cst : f32 to vector<12x12xf32>
    %c0 = arith.constant 0 : index
    %c0_0 = arith.constant 0 : index
    %c0_1 = arith.constant 0 : index
    %c0_2 = arith.constant 0 : index
    %1 = vector.load %arg1[%c0, %c0_0, %c0_1, %c0_2] : memref<1x1x16x16xf32, #tpu.memory_space<vmem>>, vector<1x1x16x16xf32>
    %2 = vector.shape_cast %1 : vector<1x1x16x16xf32> to vector<16x16xf32>
    %3 = vector.extract_strided_slice %2 {offsets = [0, 2], sizes = [12, 12], strides = [1, 1]} : vector<16x16xf32> to vector<12x12xf32>
    %cst_3 = arith.constant -21.333334 : f32
    %4 = vector.broadcast %cst_3 : f32 to vector<12x12xf32>
    %5 = arith.mulf %3, %4 : vector<12x12xf32>
    %6 = arith.addf %0, %5 : vector<12x12xf32>
    %7 = vector.extract_strided_slice %2 {offsets = [1, 2], sizes = [12, 12], strides = [1, 1]} : vector<16x16xf32> to vector<12x12xf32>
    %cst_4 = arith.constant 341.333344 : f32
    %8 = vector.broadcast %cst_4 : f32 to vector<12x12xf32>
    %9 = arith.mulf %7, %8 : vector<12x12xf32>
    %10 = arith.addf %6, %9 : vector<12x12xf32>
    %11 = vector.extract_strided_slice %2 {offsets = [2, 0], sizes = [12, 12], strides = [1, 1]} : vector<16x16xf32> to vector<12x12xf32>
    %cst_5 = arith.constant -21.333334 : f32
    %12 = vector.broadcast %cst_5 : f32 to vector<12x12xf32>
    %13 = arith.mulf %11, %12 : vector<12x12xf32>
    %14 = arith.addf %10, %13 : vector<12x12xf32>
    %15 = vector.extract_strided_slice %2 {offsets = [2, 1], sizes = [12, 12], strides = [1, 1]} : vector<16x16xf32> to vector<12x12xf32>
    %cst_6 = arith.constant 341.333344 : f32
    %16 = vector.broadcast %cst_6 : f32 to vector<12x12xf32>
    %17 = arith.mulf %15, %16 : vector<12x12xf32>
    %18 = arith.addf %14, %17 : vector<12x12xf32>
    %19 = vector.extract_strided_slice %2 {offsets = [2, 2], sizes = [12, 12], strides = [1, 1]} : vector<16x16xf32> to vector<12x12xf32>
    %cst_7 = arith.constant -1.280000e+03 : f32
    %20 = vector.broadcast %cst_7 : f32 to vector<12x12xf32>
    %21 = arith.mulf %19, %20 : vector<12x12xf32>
    %22 = arith.addf %18, %21 : vector<12x12xf32>
    %23 = vector.extract_strided_slice %2 {offsets = [2, 3], sizes = [12, 12], strides = [1, 1]} : vector<16x16xf32> to vector<12x12xf32>
    %cst_8 = arith.constant 341.333344 : f32
    %24 = vector.broadcast %cst_8 : f32 to vector<12x12xf32>
    %25 = arith.mulf %23, %24 : vector<12x12xf32>
    %26 = arith.addf %22, %25 : vector<12x12xf32>
    %27 = vector.extract_strided_slice %2 {offsets = [2, 4], sizes = [12, 12], strides = [1, 1]} : vector<16x16xf32> to vector<12x12xf32>
    %cst_9 = arith.constant -21.333334 : f32
    %28 = vector.broadcast %cst_9 : f32 to vector<12x12xf32>
    %29 = arith.mulf %27, %28 : vector<12x12xf32>
    %30 = arith.addf %26, %29 : vector<12x12xf32>
    %31 = vector.extract_strided_slice %2 {offsets = [3, 2], sizes = [12, 12], strides = [1, 1]} : vector<16x16xf32> to vector<12x12xf32>
    %cst_10 = arith.constant 341.333344 : f32
    %32 = vector.broadcast %cst_10 : f32 to vector<12x12xf32>
    %33 = arith.mulf %31, %32 : vector<12x12xf32>
    %34 = arith.addf %30, %33 : vector<12x12xf32>
    %35 = vector.extract_strided_slice %2 {offsets = [4, 2], sizes = [12, 12], strides = [1, 1]} : vector<16x16xf32> to vector<12x12xf32>
    %cst_11 = arith.constant -21.333334 : f32
    %36 = vector.broadcast %cst_11 : f32 to vector<12x12xf32>
    %37 = arith.mulf %35, %36 : vector<12x12xf32>
    %38 = arith.addf %34, %37 : vector<12x12xf32>
    %c0_12 = arith.constant 0 : index
    %c0_13 = arith.constant 0 : index
    %c0_14 = arith.constant 0 : index
    %c0_15 = arith.constant 0 : index
    %39 = vector.load %arg2[%c0_12, %c0_13, %c0_14, %c0_15] : memref<1x1x12x12xf32, #tpu.memory_space<vmem>>, vector<1x1x12x12xf32>
    %40 = vector.shape_cast %39 : vector<1x1x12x12xf32> to vector<12x12xf32>
    %41 = vector.shape_cast %38 : vector<12x12xf32> to vector<1x1x12x12xf32>
    tpu.vector_store %arg2[%c0_12, %c0_13, %c0_14, %c0_15], %41 {strides = array<i32>} : memref<1x1x12x12xf32, #tpu.memory_space<vmem>>, vector<1x1x12x12xf32>,
    return
  }
  func.func @transform_0(%arg0: i32) -> (i32, i32, i32, i32) {
    %c0_i32 = arith.constant 0 : i32
    %c0_i32_0 = arith.constant 0 : i32
    %c0_i32_1 = arith.constant 0 : i32
    %c0_i32_2 = arith.constant 0 : i32
    return %arg0, %c0_i32, %c0_i32_0, %c0_i32_1 : i32, i32, i32, i32
  }
  func.func @transform_1(%arg0: i32) -> (i32, i32, i32, i32) {
    %c0_i32 = arith.constant 0 : i32
    %c0_i32_0 = arith.constant 0 : i32
    %c0_i32_1 = arith.constant 0 : i32
    %c0_i32_2 = arith.constant 0 : i32
    return %arg0, %c0_i32, %c0_i32_0, %c0_i32_1 : i32, i32, i32, i32
  }
}

</mosaic_0001>

<bundles_post_ra>
// kernel: tpu_custom_call.1
= control target key start
LH: loop header
LB: loop body
LE: loop exit
PB: predicated region body
PF: predicated region fallthrough
CT: control target
= control target key end

     0   :  { %6 = vsyncpa [#allocation3], 0  ;;  %s556_s0 = inlined_call_operand.hbm [shape: f32[2,1,16,16], index: 0, kind: input, shape index: {}]   ;;  %s557_s1 = inlined_call_operand.vmem [shape: f32[2,1,12,12], index: 1, kind: output, shape index: {}]  }
   0x1   :  { %8 = vsyncpa [#allocation3 + $0x1], 0  ;;  %s444_s6 = smov 0   ;;  %s446_s7 = smov 0  }
   0x2   :  { %s448_s8 = smov 0   ;;  %s450_s9 = smov 0  }
   0x3 LB: > { %s463_s10 = sadd.s32 4294967295, %s425_s9   ;;  %s466_s11 = sadd.s32 1, %s425_s9   ;;  %s425_s9 = sphi %s450_s9, %s564_s9   ;;  %s421_s8 = sphi %s448_s8, %s563_s8   ;;  %s417_s7 = sphi %s446_s7, %s562_s7   ;;  %s413_s6 = sphi %s444_s6, %s561_s6  }
   0x4   : > { %s18_s12 = ssub.s32 %s425_s9, %s466_s11  ;;  %s21_s13 = sadd.s32 1, %s421_s8 }
   0x5   : > { %p19_p0 = scmp.eq.s32.totalorder %s18_s12, 0  ;;  %p28_p1 = scmp.ne.s32.totalorder %s421_s8, %s417_s7 }
   0x6   : > { %p29_p2 = scmp.eq.s32.totalorder %s425_s9, 0  ;;  %p34_p3 = scmp.ne.s32.totalorder %s417_s7, %s413_s6 }
   0x7   : > { %s476_s14 = scalar_select %p19_p0, %s421_s8, %s21_s13  }
   0x8   : > { %p30_p4 = por %p29_p2, %p28_p1  ;;  %p35_p5 = scmp.eq.s32.totalorder %s463_s10, 0 }
   0x9   : > { %p322_p6 = scmp.lt.s32.totalorder %s425_s9, 2  ;;  %s84_s16 = sand.u32 1, %s421_s8  }
   0xa   : > { %p480_p7 = por %p35_p5, %p34_p3  ;;  %s305_s17 = sshll.u32 %s84_s16, 4 }
   0xb   : > { %s314_s18 = sshll.u32 %s425_s9, 8  ;;  %s88_s22 = scalar_lea.vmem [#allocation2], %s305_s17 }
   0xc   : > { %s489_s21 = scalar_lea.hbm %s556_s0, %s314_s18  ;;  %s95_s23 = sshll.u32 %s88_s22, 4  ;;  %s491_s23 = int_to_ptr.vmem [resolvable:$true] %s95_s23 }
   0xd   : > { %p493_p8 = pnand %p322_p6, %p30_p4  ;;  %s498_s25 = scalar_lea.sflag [#allocation3], %s84_s16 }
   0xe   : > { %s361_s26 = scalar_lea.hbm %s489_s21, 256  ;;  %s366_s29 = scalar_lea.hbm %s556_s0, 512 }
   0xf   : > { %p362_p10 = scmp.ne.s32.totalorder %s489_s21, %s361_s26  ;;  %p363_p11 = pneg %p493_p8 }
  0x10   : > { %p367_p0 = scmp.lt.u32.totalorder %s489_s21, %s556_s0  ;;  %p368_p1 = scmp.lt.u32.totalorder %s366_s29, %s361_s26 }
  0x11   : > { %p364_p12 = pnand %p363_p11, %p362_p10  ;;  %p370_p3 = scmp.lt.u32.totalorder %s361_s26, %s489_s21 }
  0x12   : > { %p369_p2 = por %p368_p1, %p367_p0 }
  0x13   : > { %p365_p13 = pneg %p364_p12 }
  0x14   : > { %p371_p4 = por %p370_p3, %p369_p2 }
  0x16   : > { %p372_p5 = pnand %p371_p4, %p365_p13 }
  0x18   : > { %375 = shalt.err (!%p372_p5)
}
  0x19   : > { %s376_s3 = scalar_lea.vmem %s491_s23, 256  ;;  %s427_s4 = smov [#allocation2]  }
  0x1a   : > { %p377_p6 = scmp.ne.s32.totalorder %s491_s23, %s376_s3  ;;  %s381_s5 = sshll.u32 %s427_s4, 4  ;;  %s382_s5 = int_to_ptr.vmem [resolvable:$false] %s381_s5 }
  0x1b   : > { %s383_s6 = scalar_lea.vmem %s382_s5, 512  ;;  %p384_p9 = scmp.lt.s32.totalorder %s491_s23, %s382_s5 }
  0x1c   : > { %p379_p10 = pnand %p377_p6, %p363_p11  ;;  %p385_p0 = scmp.lt.s32.totalorder %s383_s6, %s376_s3 }
  0x1e   : > { %p380_p12 = pneg %p379_p10  ;;  %p386_p1 = por %p385_p0, %p384_p9 }
  0x20   : > { %p387_p2 = pnand %p386_p1, %p380_p12 }
  0x22   : > { %390 = shalt.err (!%p387_p2)
}
  0x23   : > { %s428_s12 = smov 128   ;;  %s429_s13 = smov 8  }
  0x24   : > { %321 = dma.hbm_to_vmem [thread:$0]  (!%p493_p8), %s489_s21, 256, %s491_s23, %s498_s25, %s428_s12, %s428_s12, %s429_s13  }
  0x25   : > { %p103_p11 = scmp.lt.s32.totalorder %s425_s9, 3  ;;  %p560_p13 = scmp.ge.s32.totalorder %s425_s9, 1 }
  0x27   : > { %p104_p3 = pnand %p560_p13, %p103_p11 }
  0x28   : > { %s109_s16 = sand.u32 (!%p104_p3), 1, %s417_s7  }
  0x29   : > { %107 = sbr.rel (%p104_p3) target bundleno = 304 (0x130), region = 24  ;;  %s309_s17 = sshll.u32 (!%p104_p3), %s109_s16, 4 }
  0x2a   : > { %s110_s18 = scalar_lea.sflag (!%p104_p3), [#allocation3], %s109_s16  ;;  %s113_s19 = scalar_lea.vmem (!%p104_p3), [#allocation2], %s309_s17 }
  0x30   : > { %408 = dma.done.wait (%p480_p7), %s110_s18, 256  }
  0x31   : > { %410 = vsyncadd (%p480_p7), %s110_s18, 4294967040  ;;  %v138_v0 = vld [vmem:[%s113_s19 + $0x8] sm:$0xff]  ;;  %v137_v1 = vld [vmem:[%s113_s19] sm:$0xff]  ;;  %vm157_vm0 = vcmask 1045504   ;;  %vm147_vm1 = vcmask 1046528   ;;  %s430_s9 = smov 1  }
  0x32   : > { %v144_v2 = vmul.f32 341.33334, %v138_v0  ;;  %v140_v3 = vmul.f32 -21.333334, %v138_v0  ;;  %v143_v4 = vmul.f32 341.33334, %v137_v1 }
  0x33   : > { %v139_v5 = vmul.f32 -21.333334, %v137_v1  ;;  %v181_v6 = vmul.f32 -1280.0, %v138_v0  ;;  %v180_v7 = vmul.f32 -1280.0, %v137_v1  ;;  %s431_s15 = smov 2   ;;  %vm207_vm2 = vcmask 1044480  }
  0x34   : > { %v170_v8 = vrot.slane %v144_v2, 2  ;;  %v159_v9 = vrot.slane %v140_v3, 2  ;;  %v169_v10 = vrot.slane %v143_v4, 2  ;;  %v149_v11 = vrot.slane %v144_v2, 1  ;;  %s432_s20 = smov 127   ;;  %s433_s21 = smov 126  }
  0x35   : > { %v158_v12 = vrot.slane %v139_v5, 2  ;;  %v148_v13 = vrot.slane %v143_v4, 1  ;;  %v185_v14 = vrot.slane %v181_v6, 2  ;;  %v184_v15 = vrot.slane %v180_v7, 2  ;;  %p132_p7 = scmp.lt.s32.totalorder %s463_s10, 1 }
  0x36   : > { %174 = vrot.lane.b32.xlu1 %v170_v8, %s430_s9  ;;  %163 = vrot.lane.b32.xlu0 %v159_v9, %s431_s15  ;;  %v171_v16 = vsel %vm157_vm0, %v169_v10, %v170_v8  ;;  %v154_v17 = vadd.f32 %v149_v11, %v140_v3  ;;  %v209_v18 = vrot.slane %v144_v2, 3  ;;  %v208_v22 = vrot.slane %v143_v4, 3 }
  0x37   : > { %v160_v19 = vsel %vm157_vm0, %v158_v12, %v159_v9  ;;  %v150_v20 = vsel %vm147_vm1, %v148_v13, %v149_v11  ;;  %v186_v21 = vsel %vm157_vm0, %v184_v15, %v185_v14  ;;  %v217_v24 = vrot.slane %v140_v3, 4  ;;  %s566_s10 = smov (!%p132_p7, %s463_s10), 1 }
  0x38   : > { %v153_v23 = vadd.f32 %v150_v20, %v139_v5  ;;  %vm215_vm3 = vcmask 1043456   ;;  %v216_v25 = vrot.slane %v139_v5, 4  ;;  %v210_v26 = vsel %vm207_vm2, %v208_v22, %v209_v18  ;;  %s315_s22 = sshll.u32 %s566_s10, 4 }
  0x39   : > { %s136_s25 = scalar_lea.vmem %s557_s1, %s315_s22  ;;  %vm233_vm4 = vcmask 93184   ;;  %vm231_vm5 = vcmask 97280  }
  0x3a   : > { %172 = vrot.lane.b32.xlu1 %v171_v16, %s430_s9  ;;  %161 = vrot.lane.b32.xlu0 %v160_v19, %s431_s15  ;;  %v218_v27 = vsel %vm215_vm3, %v216_v25, %v217_v24 }
  0x3e   : > { %193 = vrot.lane.b32.xlu1 %v170_v8, %s432_s20  ;;  %191 = vrot.lane.b32.xlu0 %v171_v16, %s432_s20 }
  0x42   : > { %201 = vrot.lane.b32.xlu1 %v159_v9, %s433_s21  ;;  %199 = vrot.lane.b32.xlu0 %v160_v19, %s433_s21 }
  0xa8   : > { %v175_v28 = vpop.permute.xlu1 %174  ;;  %v164_v29 = vpop.permute.xlu0 %163 }
  0xa9   : > { %v168_v30 = vadd.f32 %v164_v29, %v154_v17 }
  0xab   : > { %v179_v31 = vadd.f32 %v175_v28, %v168_v30 }
  0xac   : > { %v173_v32 = vpop.permute.xlu1 %172  ;;  %v162_v33 = vpop.permute.xlu0 %161 }
  0xad   : > { %v167_v34 = vadd.f32 %v162_v33, %v153_v23  ;;  %v190_v35 = vadd.f32 %v185_v14, %v179_v31 }
  0xaf   : > { %v178_v36 = vadd.f32 %v173_v32, %v167_v34 }
  0xb0   : > { %v194_v37 = vpop.permute.xlu1 %193  ;;  %v192_v38 = vpop.permute.xlu0 %191 }
  0xb1   : > { %v189_v39 = vadd.f32 %v186_v21, %v178_v36  ;;  %v198_v40 = vadd.f32 %v194_v37, %v190_v35 }
  0xb3   : > { %v197_v41 = vadd.f32 %v192_v38, %v189_v39 }
  0xb4   : > { %v202_v42 = vpop.permute.xlu1 %201  ;;  %v200_v43 = vpop.permute.xlu0 %199 }
  0xb5   : > { %v206_v44 = vadd.f32 %v202_v42, %v198_v40  ;;  %v205_v45 = vadd.f32 %v200_v43, %v197_v41 }
  0xb7   : > { %v214_v46 = vadd.f32 %v209_v18, %v206_v44  ;;  %v213_v47 = vadd.f32 %v210_v26, %v205_v45 }
  0xb9   : > { %v222_v48 = vadd.f32 %v217_v24, %v214_v46  ;;  %v221_v49 = vadd.f32 %v218_v27, %v213_v47 }
  0xbb   : > { %227 = vrot.lane.b32.xlu1 %v222_v48, %s433_s21  ;;  %225 = vrot.lane.b32.xlu0 %v221_v49, %s433_s21 }
 0x12d   : > { %v228_v50 = vpop.permute.xlu1 %227  ;;  %v226_v51 = vpop.permute.xlu0 %225 }
 0x12e   : > { %234 = vst.msk [vmem:[%s136_s25 + $0x8] sm:$0xf] %vm233_vm4, %v228_v50 }
 0x12f   : > { %232 = vst.msk [vmem:[%s136_s25] sm:$0xff] %vm231_vm5, %v226_v51 }
 0x130 PF: > { %p11_p8 = scmp.ge.s32.totalorder %s466_s11, 4   ;;  %s561_s6 = smov %s417_s7 }
 0x131   : > { %s562_s7 = smov %s421_s8  ;;  %s563_s8 = smov %s476_s14 }
 0x132   : > { %s564_s9 = smov %s466_s11  ;;  %13 = sbr.rel (!%p11_p8) target bundleno = 3 (0x3), region = 64 }
 0x139   :  { %256 = vsyncpa [#allocation3], 1 }
 0x13a   :  { %258 = vsyncpa [#allocation3 + $0x1], 1 }

</bundles_post_ra>
